<compile_context>
chip_gen: v7x
topology: tpu7x:2x2x1
jax: 0.10.0
libtpu: 0.0.40
codegen_flags: <defaults>
</compile_context>

<pallas_src>
import functools
import math

import jax
import jax.numpy as jnp
from jax.experimental import pallas as pl
from jax.experimental.pallas import tpu as pltpu


# -------------------------- generation-aware VMEM --------------------------- #

def _vmem_limit_bytes():
    cap = 128 * 1024 * 1024
    try:
        info = pltpu.get_tpu_info()
        cap = int(getattr(info, "vmem_capacity_bytes", cap))
    except Exception:
        cap = 64 * 1024 * 1024          # conservative fallback (v7x-sized)
    # leave headroom for compiler scratch / double buffers
    return min(int(cap * 3 // 4), 100 * 1024 * 1024)


_VMEM_LIMIT = _vmem_limit_bytes()


def _const_spec(block_shape, index_map):
    """BlockSpec for operands whose block index never changes (weights/biases):
    single-buffer them to halve their VMEM footprint."""
    try:
        return pl.BlockSpec(block_shape, index_map, pipeline_mode=pl.Buffered(1))
    except Exception:
        return pl.BlockSpec(block_shape, index_map)


def _pick_tile(m, target):
    t = min(target, m)
    while m % t != 0:
        t //= 2
    return max(t, 1)


def _pick_row_tile(m, target=512):
    t = _pick_tile(m, target)
    if m // t < 2 and t % 16 == 0:       # make sure both TensorCores get work
        t //= 2
    return max(t, 1)


def _pick_col_tile(n, target=512):
    if n <= target or n % 128 != 0:
        return n
    t = (min(target, n) // 128) * 128
    while n % t != 0:
        t -= 128
        if t < 128:
            return n
    return t


# ------------------------------ in-kernel helpers --------------------------- #

def _ln_rows(x, g, b):
    """Annotated-Transformer LayerNorm on rows of x (f32): unbiased std, eps on std."""
    d = x.shape[-1]
    mean = jnp.mean(x, axis=-1, keepdims=True)
    xc = x - mean
    var = jnp.sum(xc * xc, axis=-1, keepdims=True) * (1.0 / (d - 1))
    inv = 1.0 / (jnp.sqrt(var) + jnp.float32(1e-6))     # exact (parity w/ torch)
    return g * (xc * inv) + b


# ----------------------------- Pallas kernels ------------------------------ #

def _ln_qkv_kernel(x_ref, g_ref, b_ref, w_ref, bias_ref, o_ref):
    # x: (tm, D) f32; w: (D, 3D) bf16; out: (tm, 3D) bf16
    x = x_ref[...].astype(jnp.float32)
    nx = _ln_rows(x, g_ref[...], b_ref[...])
    y = jnp.dot(nx.astype(jnp.bfloat16), w_ref[...],
                preferred_element_type=jnp.float32)
    o_ref[...] = (y + bias_ref[...]).astype(o_ref.dtype)


def _attn_out_res_kernel(q_ref, k_ref, v_ref, m_ref, x_ref, wo_ref, bo_ref,
                         o_ref, acc_ref):
    # grid = (B, S//tq, H); head axis (2) is "arbitrary" → acc resident.
    # q: (1,1,tq,Dk) bf16 (pre-scaled), k/v: (1,1,S,Dk) bf16, m: (1,1,S) f32,
    # x(resid): (1,tq,D) f32, wo: (1,Dk,D) bf16, out: (1,tq,D) f32.
    h = pl.program_id(2)

    @pl.when(h == 0)
    def _():
        acc_ref[...] = jnp.zeros_like(acc_ref)

    qh = q_ref[0, 0]                                     # (tq, Dk)
    kh = k_ref[0, 0]                                     # (S,  Dk)
    vh = v_ref[0, 0]                                     # (S,  Dk)
    s = jax.lax.dot_general(qh, kh, (((1,), (1,)), ((), ())),
                            preferred_element_type=jnp.float32)   # (tq, S)
    # mask is exactly 0.0 / 1.0 over keys (1 = attend); masked_fill(mask==0,-1e9)
    s = jnp.where(m_ref[0] == 0.0, jnp.float32(-1e9), s)
    s = s - jnp.max(s, axis=-1, keepdims=True)           # softmax in f32
    p = jnp.exp(s)
    p = p * pl.reciprocal(jnp.sum(p, axis=-1, keepdims=True), approx=True)
    oh = jnp.dot(p.astype(jnp.bfloat16), vh,
                 preferred_element_type=jnp.float32)      # (tq, Dk)
    # attn @ Wo == sum_h  oh @ Wo[h]  — fold the output projection per head.
    acc_ref[...] += jnp.dot(oh.astype(jnp.bfloat16), wo_ref[0],
                            preferred_element_type=jnp.float32)   # (tq, D)

    @pl.when(h == pl.num_programs(2) - 1)
    def _():
        o_ref[0] = (x_ref[0].astype(jnp.float32) + acc_ref[...]
                    + bo_ref[...]).astype(o_ref.dtype)


def _ln_ffn_res_kernel(x_ref, g_ref, b_ref, w1_ref, b1_ref, w2_ref, b2_ref,
                       *rest, final_ln):
    # grid = (M//tm, F//tf); F axis (1) is "arbitrary".
    # x: (tm, D) f32; w1: (D, tf) bf16; w2: (tf, D) bf16; out: (tm, D) f32.
    if final_ln:
        fg_ref, fb_ref, o_ref, nx_ref, acc_ref = rest
    else:
        o_ref, nx_ref, acc_ref = rest
    f = pl.program_id(1)

    @pl.when(f == 0)
    def _():
        nx_ref[...] = _ln_rows(x_ref[...].astype(jnp.float32),
                               g_ref[...], b_ref[...])
        acc_ref[...] = jnp.zeros_like(acc_ref)

    hblk = jnp.dot(nx_ref[...].astype(jnp.bfloat16), w1_ref[...],
                   preferred_element_type=jnp.float32)             # (tm, tf)
    hblk = jnp.maximum(hblk + b1_ref[...], 0.0)
    acc_ref[...] += jnp.dot(hblk.astype(jnp.bfloat16), w2_ref[...],
                            preferred_element_type=jnp.float32)    # (tm, D)

    @pl.when(f == pl.num_programs(1) - 1)
    def _():
        y = x_ref[...].astype(jnp.float32) + acc_ref[...] + b2_ref[...]
        if final_ln:                      # fused final encoder LayerNorm
            y = _ln_rows(y, fg_ref[...], fb_ref[...])
        o_ref[...] = y.astype(o_ref.dtype)


def _layernorm_kernel(x_ref, g_ref, b_ref, o_ref):
    x = x_ref[...].astype(jnp.float32)
    o_ref[...] = _ln_rows(x, g_ref[...], b_ref[...]).astype(o_ref.dtype)


# ------------------------------ Thin wrappers ------------------------------ #

def ln_qkv(x2d, g, b, wqkv, bqkv):
    M, D = x2d.shape
    N3 = wqkv.shape[1]
    tm = _pick_row_tile(M)
    return pl.pallas_call(
        _ln_qkv_kernel,
        grid=(M // tm,),
        in_specs=[
            pl.BlockSpec((tm, D), lambda i: (i, 0)),
            _const_spec((1, D), lambda i: (0, 0)),
            _const_spec((1, D), lambda i: (0, 0)),
            _const_spec((D, N3), lambda i: (0, 0)),
            _const_spec((1, N3), lambda i: (0, 0)),
        ],
        out_specs=pl.BlockSpec((tm, N3), lambda i: (i, 0)),
        out_shape=jax.ShapeDtypeStruct((M, N3), jnp.bfloat16),   # bf16 intermediate
        compiler_params=pltpu.CompilerParams(
            dimension_semantics=("parallel",),
            vmem_limit_bytes=_VMEM_LIMIT),
    )(x2d, g.reshape(1, D), b.reshape(1, D), wqkv, bqkv.reshape(1, N3))


def attn_out_residual(qkv, mask3, x, wo3, bo, H):
    B, S, N3 = qkv.shape
    D = N3 // 3
    Dk = D // H
    # Split heads in XLA (one bf16 relayout) so every attention block is
    # lane-dense with Dk as the FULL last dim of a (B, H, S, Dk) array.
    # TODO(synk): fold this relayout into the QKV kernel epilogue at scale.
    def heads(t):
        return t.reshape(B, S, H, Dk).transpose(0, 2, 1, 3)
    q4 = heads(qkv[:, :, :D])
    k4 = heads(qkv[:, :, D:2 * D])
    v4 = heads(qkv[:, :, 2 * D:])

    tq = _pick_tile(S, 256)
    return pl.pallas_call(
        _attn_out_res_kernel,
        grid=(B, S // tq, H),
        in_specs=[
            pl.BlockSpec((1, 1, tq, Dk), lambda b, qi, h: (b, h, qi, 0)),
            pl.BlockSpec((1, 1, S, Dk), lambda b, qi, h: (b, h, 0, 0)),
            pl.BlockSpec((1, 1, S, Dk), lambda b, qi, h: (b, h, 0, 0)),
            pl.BlockSpec((1, 1, S), lambda b, qi, h: (b, 0, 0)),
            pl.BlockSpec((1, tq, D), lambda b, qi, h: (b, qi, 0)),
            pl.BlockSpec((1, Dk, D), lambda b, qi, h: (h, 0, 0)),
            _const_spec((1, D), lambda b, qi, h: (0, 0)),
        ],
        out_specs=pl.BlockSpec((1, tq, D), lambda b, qi, h: (b, qi, 0)),
        out_shape=jax.ShapeDtypeStruct((B, S, D), x.dtype),
        scratch_shapes=[pltpu.VMEM((tq, D), jnp.float32)],
        compiler_params=pltpu.CompilerParams(
            dimension_semantics=("parallel", "parallel", "arbitrary"),
            vmem_limit_bytes=_VMEM_LIMIT),
    )(q4, k4, v4, mask3, x, wo3, bo.reshape(1, D))


def ln_ffn_residual(x2d, g, b, w1, b1, w2, b2, final_gb=None):
    M, D = x2d.shape
    F = w1.shape[1]
    tm = _pick_row_tile(M)
    tf = _pick_col_tile(F)
    final_ln = final_gb is not None

    in_specs = [
        pl.BlockSpec((tm, D), lambda i, f: (i, 0)),
        _const_spec((1, D), lambda i, f: (0, 0)),
        _const_spec((1, D), lambda i, f: (0, 0)),
        pl.BlockSpec((D, tf), lambda i, f: (0, f)),
        pl.BlockSpec((1, tf), lambda i, f: (0, f)),
        pl.BlockSpec((tf, D), lambda i, f: (f, 0)),
        _const_spec((1, D), lambda i, f: (0, 0)),
    ]
    args = [x2d, g.reshape(1, D), b.reshape(1, D), w1, b1.reshape(1, F), w2,
            b2.reshape(1, D)]
    if final_ln:
        fg, fb = final_gb
        in_specs += [_const_spec((1, D), lambda i, f: (0, 0)),
                     _const_spec((1, D), lambda i, f: (0, 0))]
        args += [fg.reshape(1, D), fb.reshape(1, D)]

    return pl.pallas_call(
        functools.partial(_ln_ffn_res_kernel, final_ln=final_ln),
        grid=(M // tm, F // tf),
        in_specs=in_specs,
        out_specs=pl.BlockSpec((tm, D), lambda i, f: (i, 0)),
        out_shape=jax.ShapeDtypeStruct((M, D), x2d.dtype),
        scratch_shapes=[pltpu.VMEM((tm, D), jnp.float32),
                        pltpu.VMEM((tm, D), jnp.float32)],
        compiler_params=pltpu.CompilerParams(
            dimension_semantics=("parallel", "arbitrary"),
            vmem_limit_bytes=_VMEM_LIMIT),
    )(*args)


def layernorm(x2d, gamma, beta):
    # Only used when there are zero encoder layers (final LN is otherwise fused).
    M, D = x2d.shape
    tm = _pick_row_tile(M)
    return pl.pallas_call(
        _layernorm_kernel,
        grid=(M // tm,),
        in_specs=[
            pl.BlockSpec((tm, D), lambda i: (i, 0)),
            _const_spec((1, D), lambda i: (0, 0)),
            _const_spec((1, D), lambda i: (0, 0)),
        ],
        out_specs=pl.BlockSpec((tm, D), lambda i: (i, 0)),
        out_shape=jax.ShapeDtypeStruct((M, D), x2d.dtype),
        compiler_params=pltpu.CompilerParams(
            dimension_semantics=("parallel",),
            vmem_limit_bytes=_VMEM_LIMIT),
    )(x2d, gamma.reshape(1, D), beta.reshape(1, D))


# ------------------------------ Encoder model ------------------------------ #

def encoder_layer_forward(x, mask3, p, final_gb=None):
    B, S, D = x.shape
    x2 = x.reshape(B * S, D)

    # Sublayer 0: x + W_o(attn(LayerNorm(x)))   (dropout = identity)
    qkv = ln_qkv(x2, p["ln1_g"], p["ln1_b"], p["wqkv"], p["bqkv"])   # (B*S, 3D) bf16
    x = attn_out_residual(qkv.reshape(B, S, 3 * D), mask3, x,
                          p["wo3"], p["bo"], p["h"])                 # (B, S, D) f32

    # Sublayer 1: x + FFN(LayerNorm(x))  (+ fused final LN on the last layer)
    x2 = ln_ffn_residual(x.reshape(B * S, D), p["ln2_g"], p["ln2_b"],
                         p["w1"], p["b1"], p["w2"], p["b2"],
                         final_gb=final_gb)
    return x2.reshape(B, S, D)


def encoder_forward(x, mask, layer_params, final_g, final_b):
    B, S, D = x.shape
    mask3 = mask.reshape(B, 1, S).astype(jnp.float32)
    n = len(layer_params)
    if n == 0:
        return layernorm(x.reshape(B * S, D), final_g, final_b).reshape(B, S, D)
    for li, p in enumerate(layer_params):
        final_gb = (final_g, final_b) if li == n - 1 else None
        x = encoder_layer_forward(x, mask3, p, final_gb=final_gb)
    return x


# ----------------------------- Param construction -------------------------- #

def init_params(key, n_layers, d_model, n_heads, d_ff):
    def dense(k, fan_in, fan_out):
        return (jax.random.normal(k, (fan_in, fan_out), jnp.float32)
                * (1.0 / math.sqrt(fan_in)))

    layers = []
    for _ in range(n_layers):
        ks = jax.random.split(key, 8)
        key = ks[0]
        layers.append(dict(
            h=n_heads,
            ln1_g=jnp.ones((d_model,), jnp.float32),
            ln1_b=jnp.zeros((d_model,), jnp.float32),
            wq=dense(ks[1], d_model, d_model), bq=jnp.zeros((d_model,), jnp.float32),
            wk=dense(ks[2], d_model, d_model), bk=jnp.zeros((d_model,), jnp.float32),
            wv=dense(ks[3], d_model, d_model), bv=jnp.zeros((d_model,), jnp.float32),
            wo=dense(ks[4], d_model, d_model), bo=jnp.zeros((d_model,), jnp.float32),
            ln2_g=jnp.ones((d_model,), jnp.float32),
            ln2_b=jnp.zeros((d_model,), jnp.float32),
            w1=dense(ks[5], d_model, d_ff), b1=jnp.zeros((d_ff,), jnp.float32),
            w2=dense(ks[6], d_ff, d_model), b2=jnp.zeros((d_model,), jnp.float32),
        ))
    final_g = jnp.ones((d_model,), jnp.float32)
    final_b = jnp.zeros((d_model,), jnp.float32)
    return layers, final_g, final_b


def prep_params(layer_params):
    """Fuse QKV weights (with the 1/sqrt(d_k) scale folded into Q), reshape Wo
    per head, and cast MXU weights to bf16."""
    prepped = []
    for p in layer_params:
        H = p["h"]
        D = p["wq"].shape[0]
        scale = 1.0 / math.sqrt(D // H)
        wqkv = jnp.concatenate([p["wq"] * scale, p["wk"], p["wv"]], axis=1)
        bqkv = jnp.concatenate([p["bq"] * scale, p["bk"], p["bv"]])
        # TODO(synk): optionally quantize wqkv/w1/w2/wo3 to fp8 on v7x.
        prepped.append(dict(
            h=H,
            ln1_g=p["ln1_g"], ln1_b=p["ln1_b"],
            wqkv=wqkv.astype(jnp.bfloat16),
            bqkv=bqkv,
            wo3=p["wo"].reshape(H, D // H, D).astype(jnp.bfloat16),
            bo=p["bo"],
            ln2_g=p["ln2_g"], ln2_b=p["ln2_b"],
            w1=p["w1"].astype(jnp.bfloat16), b1=p["b1"],
            w2=p["w2"].astype(jnp.bfloat16), b2=p["b2"],
        ))
    return prepped


# ----------------------------------- Main ----------------------------------- #

if __name__ == "__main__":
    B, S, D, H, F, N = 2, 8, 32, 4, 64, 2

    key = jax.random.PRNGKey(0)
    k_x, k_p = jax.random.split(key)
    x = jax.random.normal(k_x, (B, S, D), jnp.float32)
    # mask: 1 = attend, 0 = padded.  Pad out the last 2 positions of batch 1.
    mask = jnp.ones((B, S), jnp.float32).at[1, -2:].set(0.0)

    layer_params, final_g, final_b = init_params(k_p, N, D, H, F)
    params = prep_params(layer_params)

    out = encoder_forward(x, mask, params, final_g, final_b)
    out = jax.block_until_ready(out)
    assert out.shape == (B, S, D) and out.dtype == jnp.float32
    assert bool(jnp.all(jnp.isfinite(out)))
    print("KERNEL_OK")
</pallas_src>

<mosaic_0001>
module attributes {stable_mosaic.version = 11 : i64} {
  func.func @_ln_qkv_kernel(%arg0: i32, %arg1: memref<8x32xf32, #tpu.memory_space<vmem>>, %arg2: memref<1x32xf32, #tpu.memory_space<vmem>>, %arg3: memref<1x32xf32, #tpu.memory_space<vmem>>, %arg4: memref<32x96xbf16, #tpu.memory_space<vmem>>, %arg5: memref<1x96xf32, #tpu.memory_space<vmem>>, %arg6: memref<8x96xbf16, #tpu.memory_space<vmem>>) attributes {dimension_semantics = [#tpu.dimension_semantics<parallel>], iteration_bounds = array<i64: 2>, scalar_prefetch = 0 : i64, scratch_operands = 0 : i64, tpu.core_type = #tpu.core_type<tc>, window_params = [{transform_indices = @transform_0, window_bounds = array<i64: 8, 32>}, {pipeline_mode = #tpu.pipeline_mode<synchronous>, transform_indices = @transform_1, window_bounds = array<i64: 1, 32>}, {pipeline_mode = #tpu.pipeline_mode<synchronous>, transform_indices = @transform_2, window_bounds = array<i64: 1, 32>}, {pipeline_mode = #tpu.pipeline_mode<synchronous>, transform_indices = @transform_3, window_bounds = array<i64: 32, 96>}, {pipeline_mode = #tpu.pipeline_mode<synchronous>, transform_indices = @transform_4, window_bounds = array<i64: 1, 96>}, {transform_indices = @transform_5, window_bounds = array<i64: 8, 96>}]} {
    %c0 = arith.constant 0 : index
    %c0_0 = arith.constant 0 : index
    %0 = vector.load %arg1[%c0, %c0_0] : memref<8x32xf32, #tpu.memory_space<vmem>>, vector<8x32xf32>
    %c0_1 = arith.constant 0 : index
    %c0_2 = arith.constant 0 : index
    %1 = vector.load %arg2[%c0_1, %c0_2] : memref<1x32xf32, #tpu.memory_space<vmem>>, vector<1x32xf32>
    %c0_3 = arith.constant 0 : index
    %c0_4 = arith.constant 0 : index
    %2 = vector.load %arg3[%c0_3, %c0_4] : memref<1x32xf32, #tpu.memory_space<vmem>>, vector<1x32xf32>
    %cst = arith.constant dense<0.000000e+00> : vector<8xf32>
    %3 = vector.multi_reduction <add>, %0, %cst [1] : vector<8x32xf32> to vector<8xf32>
    %4 = vector.shape_cast %3 : vector<8xf32> to vector<8x1xf32>
    %cst_5 = arith.constant 3.200000e+01 : f32
    %5 = vector.broadcast %cst_5 : f32 to vector<8x1xf32>
    %6 = arith.divf %4, %5 : vector<8x1xf32>
    %7 = vector.broadcast %6 : vector<8x1xf32> to vector<8x32xf32>
    %8 = arith.subf %0, %7 : vector<8x32xf32>
    %9 = arith.mulf %8, %8 : vector<8x32xf32>
    %cst_6 = arith.constant dense<0.000000e+00> : vector<8xf32>
    %10 = vector.multi_reduction <add>, %9, %cst_6 [1] : vector<8x32xf32> to vector<8xf32>
    %11 = vector.shape_cast %10 : vector<8xf32> to vector<8x1xf32>
    %cst_7 = arith.constant 0.0322580636 : f32
    %12 = vector.broadcast %cst_7 : f32 to vector<8x1xf32>
    %13 = arith.mulf %11, %12 : vector<8x1xf32>
    %14 = math.sqrt %13 : vector<8x1xf32>
    %cst_8 = arith.constant 9.99999997E-7 : f32
    %15 = vector.broadcast %cst_8 : f32 to vector<8x1xf32>
    %16 = arith.addf %14, %15 : vector<8x1xf32>
    %cst_9 = arith.constant 1.000000e+00 : f32
    %17 = vector.broadcast %cst_9 : f32 to vector<8x1xf32>
    %18 = arith.divf %17, %16 : vector<8x1xf32>
    %19 = vector.broadcast %18 : vector<8x1xf32> to vector<8x32xf32>
    %20 = arith.mulf %8, %19 : vector<8x32xf32>
    %21 = vector.broadcast %1 : vector<1x32xf32> to vector<8x32xf32>
    %22 = arith.mulf %21, %20 : vector<8x32xf32>
    %23 = vector.broadcast %2 : vector<1x32xf32> to vector<8x32xf32>
    %24 = arith.addf %22, %23 : vector<8x32xf32>
    %25 = arith.truncf %24 : vector<8x32xf32> to vector<8x32xbf16>
    %c0_10 = arith.constant 0 : index
    %c0_11 = arith.constant 0 : index
    %26 = vector.load %arg4[%c0_10, %c0_11] : memref<32x96xbf16, #tpu.memory_space<vmem>>, vector<32x96xbf16>
    %cst_12 = arith.constant dense<0.000000e+00> : vector<8x96xf32>
    %27 = tpu.matmul %25, %26, %cst_12 {dimension_numbers = #tpu.dot_dimension_numbers<[1], [0], [0], [1], [0, 0, 1, 1], [], []>} : vector<8x32xbf16>, vector<32x96xbf16>, vector<8x96xf32> -> vector<8x96xf32>
    %c0_13 = arith.constant 0 : index
    %c0_14 = arith.constant 0 : index
    %28 = vector.load %arg5[%c0_13, %c0_14] : memref<1x96xf32, #tpu.memory_space<vmem>>, vector<1x96xf32>
    %29 = vector.broadcast %28 : vector<1x96xf32> to vector<8x96xf32>
    %30 = arith.addf %27, %29 : vector<8x96xf32>
    %31 = arith.truncf %30 : vector<8x96xf32> to vector<8x96xbf16>
    %c0_15 = arith.constant 0 : index
    %c0_16 = arith.constant 0 : index
    %32 = vector.load %arg6[%c0_15, %c0_16] : memref<8x96xbf16, #tpu.memory_space<vmem>>, vector<8x96xbf16>
    tpu.vector_store %arg6[%c0_15, %c0_16], %31 {strides = array<i32>} : memref<8x96xbf16, #tpu.memory_space<vmem>>, vector<8x96xbf16>,
    return
  }
  func.func @transform_0(%arg0: i32) -> (i32, i32) {
    %c0_i32 = arith.constant 0 : i32
    %c0_i32_0 = arith.constant 0 : i32
    return %arg0, %c0_i32 : i32, i32
  }
  func.func @transform_1(%arg0: i32) -> (i32, i32) {
    %c0_i32 = arith.constant 0 : i32
    %c0_i32_0 = arith.constant 0 : i32
    %c0_i32_1 = arith.constant 0 : i32
    return %c0_i32, %c0_i32_0 : i32, i32
  }
  func.func @transform_2(%arg0: i32) -> (i32, i32) {
    %c0_i32 = arith.constant 0 : i32
    %c0_i32_0 = arith.constant 0 : i32
    %c0_i32_1 = arith.constant 0 : i32
    return %c0_i32, %c0_i32_0 : i32, i32
  }
  func.func @transform_3(%arg0: i32) -> (i32, i32) {
    %c0_i32 = arith.constant 0 : i32
    %c0_i32_0 = arith.constant 0 : i32
    %c0_i32_1 = arith.constant 0 : i32
    return %c0_i32, %c0_i32_0 : i32, i32
  }
  func.func @transform_4(%arg0: i32) -> (i32, i32) {
    %c0_i32 = arith.constant 0 : i32
    %c0_i32_0 = arith.constant 0 : i32
    %c0_i32_1 = arith.constant 0 : i32
    return %c0_i32, %c0_i32_0 : i32, i32
  }
  func.func @transform_5(%arg0: i32) -> (i32, i32) {
    %c0_i32 = arith.constant 0 : i32
    %c0_i32_0 = arith.constant 0 : i32
    return %arg0, %c0_i32 : i32, i32
  }
}

</mosaic_0001>

<bundles_post_ra>
// kernel: tpu_custom_call.1
= control target key start
LH: loop header
LB: loop body
LE: loop exit
PB: predicated region body
PF: predicated region fallthrough
CT: control target
= control target key end

     0   :  { %10 = vsyncpa [#allocation3], 0  ;;  %s934_s0 = inlined_call_operand.hbm [shape: f32[16,32], index: 0, kind: input, shape index: {}]   ;;  %s935_s1 = inlined_call_operand.vmem [shape: f32[1,32], index: 1, kind: input, shape index: {}]   ;;  %s936_s2 = inlined_call_operand.vmem [shape: f32[1,32], index: 2, kind: input, shape index: {}]   ;;  %s937_s3 = inlined_call_operand.hbm [shape: bf16[32,96], index: 3, kind: input, shape index: {}]   ;;  %s938_s4 = inlined_call_operand.vmem [shape: f32[1,96], index: 4, kind: input, shape index: {}]   ;;  %s939_s5 = inlined_call_operand.hbm [shape: bf16[16,96], index: 5, kind: output, shape index: {}]  }
   0x1   :  { %12 = vsyncpa [#allocation3 + $0x1], 0 }
   0x2   :  { %13 = vsyncpa [#allocation6], 0 }
   0x3   :  { %14 = vsyncpa [#allocation4], 0 }
   0x4   :  { %16 = vsyncpa [#allocation4 + $0x1], 0  ;;  %s725_s18 = smov 0   ;;  %s727_s19 = smov 0  }
   0x5   :  { %s729_s20 = smov 0   ;;  %s731_s21 = smov 0  }
   0x6 LB: > { %s746_s22 = sadd.s32 4294967295, %s686_s21   ;;  %s460_s23 = sadd.s32 4294967294, %s686_s21   ;;  %s686_s21 = sphi %s731_s21, %s959_s21   ;;  %s682_s20 = sphi %s729_s20, %s958_s20   ;;  %s678_s19 = sphi %s727_s19, %s957_s19   ;;  %s674_s18 = sphi %s725_s18, %s956_s18  }
   0x7   : > { %p42_p0 = scmp.ne.s32.totalorder %s678_s19, %s674_s18  ;;  %p940_p1 = scmp.eq.s32.totalorder %s746_s22, 0 }
   0x8   : > { %p156_p3 = scmp.eq.s32.totalorder %s460_s23, 1  ;;  %p461_p5 = scmp.ge.s32.totalorder %s686_s21, 1 }
   0x9   : > { %p755_p4 = por %p940_p1, %p42_p0  ;;  %p163_p7 = scmp.lt.s32.totalorder %s686_s21, 3 }
   0xa   : > { %p760_p6 = por %p156_p3, %p42_p0  ;;  %s688_s27 = smov [#allocation5]  }
   0xb   : > { %s943_s24 = scalar_select %p755_p4, 1, 0 }
   0xc   : > { %s944_s25 = scalar_select %p760_p6, 1, 0 }
   0xd   : > { %p765_p8 = pnand %p461_p5, %p163_p7  ;;  %s181_s28 = sshll.u32 %s688_s27, 4  ;;  %s769_s28 = int_to_ptr.vmem [resolvable:$true] %s181_s28 }
   0xe   : > { %s781_s30 = sadd.s32 1, %s686_s21   ;;  %s29_s6 = sadd.s32 1, %s682_s20 }
   0xf   : > { %s945_s26 = scalar_select %p765_p8, 1, 0 }
  0x10   : > { %p499_p9 = pneg %p765_p8  ;;  %s26_s7 = ssub.s32 %s686_s21, %s781_s30 }
  0x11   : > { %s558_s10 = scalar_lea.hbm %s937_s3, 256 }
  0x12   : > { %p776_p11 = pnand %p499_p9, %p940_p1  ;;  %p559_p12 = scmp.ne.s32.totalorder %s937_s3, %s558_s10 }
  0x13   : > { %p565_p5 = scmp.lt.u32.totalorder %s558_s10, %s937_s3 }
  0x14   : > { %p560_p13 = pneg %p776_p11 }
  0x16   : > { %p561_p0 = pnand %p560_p13, %p559_p12 }
  0x18   : > { %p562_p3 = pneg %p561_p0 }
  0x1a   : > { %p567_p7 = pnand %p565_p5, %p562_p3 }
  0x1c   : > { %570 = shalt.err (!%p567_p7)
}
  0x1d   : > { %s571_s15 = scalar_lea.vmem %s769_s28, 256  ;;  %p579_p2 = scmp.lt.s32.totalorder %s769_s28, %s769_s28 }
  0x1e   : > { %p572_p9 = scmp.ne.s32.totalorder %s769_s28, %s571_s15  ;;  %p580_p6 = scmp.lt.s32.totalorder %s571_s15, %s571_s15 }
  0x20   : > { %p574_p10 = pnand %p572_p9, %p560_p13  ;;  %p581_p4 = por %p580_p6, %p579_p2 }
  0x22   : > { %p575_p1 = pneg %p574_p10 }
  0x24   : > { %p582_p8 = pnand %p581_p4, %p575_p1 }
  0x26   : > { %585 = shalt.err (!%p582_p8)
}
  0x27   : > { %s689_s16 = smov 64   ;;  %s690_s17 = smov 4  }
  0x28   : > { %502 = dma.hbm_to_vmem [thread:$0]  (!%p776_p11), %s937_s3, 256, %s769_s28, [#allocation6], %s689_s16, %s689_s16, %s690_s17  }
  0x29   : > { %p27_p2 = scmp.eq.s32.totalorder %s26_s7, 0  ;;  %p36_p1 = scmp.ne.s32.totalorder %s682_s20, %s678_s19 }
  0x2a   : > { %p37_p4 = scmp.eq.s32.totalorder %s686_s21, 0  ;;  %p512_p6 = scmp.lt.s32.totalorder %s686_s21, 2 }
  0x2b   : > { %s812_s8 = scalar_select %p27_p2, %s682_s20, %s29_s6  }
  0x2c   : > { %p38_p8 = por %p37_p4, %p36_p1  ;;  %p947_p10 = scmp.eq.s32.totalorder %s746_s22, 1 }
  0x2d   : > { %s198_s10 = sand.u32 1, %s682_s20   ;;  %s465_s11 = sshll.u32 %s686_s21, 7 }
  0x2e   : > { %p816_p12 = por %p947_p10, %p36_p1  ;;  %s464_s12 = sshll.u32 %s198_s10, 3 }
  0x2f   : > { %s825_s14 = scalar_lea.hbm %s934_s0, %s465_s11  ;;  %s202_s28 = scalar_lea.vmem [#allocation2], %s464_s12 }
  0x30   : > { %s209_s6 = sshll.u32 %s202_s28, 4  ;;  %p827_p11 = pnand %p512_p6, %p38_p8  ;;  %s831_s6 = int_to_ptr.vmem [resolvable:$true] %s209_s6 }
  0x31   : > { %s199_s15 = scalar_lea.sflag [#allocation3], %s198_s10  ;;  %s586_s16 = scalar_lea.hbm %s825_s14, 128 }
  0x32   : > { %p587_p13 = scmp.ne.s32.totalorder %s825_s14, %s586_s16  ;;  %p588_p0 = pneg %p827_p11 }
  0x33   : > { %s591_s27 = scalar_lea.hbm %s934_s0, 256  ;;  %p592_p7 = scmp.lt.u32.totalorder %s825_s14, %s934_s0 }
  0x34   : > { %p589_p3 = pnand %p588_p0, %p587_p13  ;;  %p593_p9 = scmp.lt.u32.totalorder %s591_s27, %s586_s16 }
  0x35   : > { %p595_p1 = scmp.lt.u32.totalorder %s586_s16, %s825_s14 }
  0x36   : > { %p590_p5 = pneg %p589_p3  ;;  %p594_p2 = por %p593_p9, %p592_p7 }
  0x38   : > { %p596_p4 = por %p595_p1, %p594_p2 }
  0x3a   : > { %p597_p6 = pnand %p596_p4, %p590_p5 }
  0x3c   : > { %600 = shalt.err (!%p597_p6)
}
  0x3d   : > { %s601_s10 = scalar_lea.vmem %s831_s6, 128  ;;  %s691_s29 = smov [#allocation2]  }
  0x3e   : > { %p602_p8 = scmp.ne.s32.totalorder %s831_s6, %s601_s10  ;;  %s606_s13 = sshll.u32 %s691_s29, 4  ;;  %s607_s13 = int_to_ptr.vmem [resolvable:$false] %s606_s13 }
  0x3f   : > { %s608_s28 = scalar_lea.vmem %s607_s13, 256  ;;  %p609_p3 = scmp.lt.s32.totalorder %s831_s6, %s607_s13 }
  0x40   : > { %p604_p10 = pnand %p602_p8, %p588_p0  ;;  %p610_p7 = scmp.lt.s32.totalorder %s608_s28, %s601_s10 }
  0x42   : > { %p605_p13 = pneg %p604_p10  ;;  %p611_p9 = por %p610_p7, %p609_p3 }
  0x44   : > { %p612_p2 = pnand %p611_p9, %p605_p13 }
  0x46   : > { %615 = shalt.err (!%p612_p2)
}
  0x47   : > { %506 = dma.hbm_to_vmem [thread:$0]  (!%p827_p11), %s825_s14, 128, %s831_s6, %s199_s15  }
  0x48   : > { %p950_p5 = scmp.ne.s32.totalorder %s945_s26, 0 }
  0x49   : > { %s861_s16 = sand.u32 (!%p950_p5), 1, %s678_s19   ;;  %p951_p0 = scmp.ne.s32.totalorder (!%p950_p5), %s943_s24, 0 }
  0x4a   : > { %218 = sbr.rel (%p950_p5) target bundleno = 646 (0x286), region = 40  ;;  %s467_s17 = sshll.u32 (!%p950_p5), %s861_s16, 3 }
  0x4b   : > { %s221_s23 = scalar_lea.sflag (!%p950_p5), [#allocation3], %s861_s16  ;;  %s224_s27 = scalar_lea.vmem (!%p950_p5), [#allocation2], %s467_s17 }
  0x51   : > { %661 = dma.done.wait (%p951_p0), %s221_s23, 128  }
  0x52   : > { %663 = vsyncadd (%p951_p0), %s221_s23, 4294967168  ;;  %p952_p1 = scmp.eq.s32.totalorder %s746_s22, 0 }
  0x54   : > { %665 = dma.done.wait (%p952_p1), [#allocation6], 256   ;;  %p953_p11 = pmov %p952_p1 }
  0x55   : > { %vm259_vm0 = vcmask 261120   ;;  %v256_v0 = vld [vmem:[%s224_s27] sm:$0xff]  ;;  %v552_v7 = vld [vmem:[#allocation5] sm:$0xff]   ;;  %v692_v8 = vmov 0.0   ;;  %vm693_vm1 = vmmov 0   ;;  %v553_v9 = vld [vmem:[#allocation5 + $0x8] sm:$0xff]  }
  0x56   : > { %667 = vsyncadd (%p953_p11), [#allocation6], 4294967040  ;;  %v260_v1 = vsel %vm259_vm0, %v256_v0, 0.0  ;;  %483 = vmatprep.subr.bf16.mxu0 %v692_v8  ;;  %487 = vmatprep.mubr.msk.bf16.mxu0 %vm693_vm1, %v692_v8  ;;  %v470_v19 = vld [vmem:[%s935_s1] ss:$0 sm:$0xff]  ;;  %s469_s7 = sshll.u32 %s861_s16, 2 }
  0x57   : > { %261 = vadd.xlane.f32.xlu0 %v260_v1  ;;  %484 = vmatpush3.bf16.msra.mxu0 %v552_v7  ;;  %v471_v21 = vld [vmem:[%s936_s2] ss:$0 sm:$0xff]  ;;  %s477_s12 = sshll.u32 %s746_s22, 6  ;;  %s254_s10 = scalar_lea.vmem [#allocation7], %s469_s7  ;;  %vm364_vm4 = vcmask 781312  }
  0x58   : > { %485 = vmatprep.subr.bf16.mxu0 %v692_v8  ;;  %v472_v25 = vld [vmem:[%s938_s4] ss:$0 sm:$0xff]  ;;  %s380_s29 = sshll.u32 %s254_s10, 4  ;;  %s890_s17 = scalar_lea.hbm %s939_s5, %s477_s12  ;;  %s892_s29 = int_to_ptr.vmem [resolvable:$true] %s380_s29 }
  0x59   : > { %s367_s22 = scalar_lea.sflag [#allocation4], %s861_s16  ;;  %s616_s23 = scalar_lea.vmem %s892_s29, 64 }
  0x5a   : > { %p617_p4 = scmp.ne.s32.totalorder %s892_s29, %s616_s23  ;;  %s694_s27 = smov [#allocation7]  }
  0x5b   : > { %486 = vmatpush3.bf16.msra.mxu0 %v553_v9  ;;  %s620_s24 = sshll.u32 %s694_s27, 4  ;;  %s621_s24 = int_to_ptr.vmem [resolvable:$false] %s620_s24 }
  0x5c   : > { %p618_p6 = pnand %p617_p4, %p816_p12  ;;  %s622_s26 = scalar_lea.vmem %s621_s24, 128 }
  0x5d   : > { %p623_p10 = scmp.lt.s32.totalorder %s892_s29, %s621_s24  ;;  %p624_p13 = scmp.lt.s32.totalorder %s622_s26, %s616_s23 }
  0x5e   : > { %p619_p8 = pneg %p618_p6 }
  0x5f   : > { %p625_p3 = por %p624_p13, %p623_p10 }
  0x61   : > { %p626_p7 = pnand %p625_p3, %p619_p8 }
  0xe4   : > { %v262_v2 = vpop.xlane.xlu0 %261 }
  0xe5   : > { %v264_v3 = vmul.f32 0.03125, %v262_v2 }
  0xe7   : > { %v265_v4 = vsub.f32 %v256_v0, %v264_v3 }
  0xe9   : > { %v266_v5 = vmul.f32 %v265_v4, %v265_v4 }
  0xeb   : > { %v267_v6 = vsel %vm259_vm0, %v266_v5, 0.0 }
  0xec   : > { %268 = vadd.xlane.f32.xlu0 %v267_v6 }
 0x179   : > { %v269_v10 = vpop.xlane.xlu0 %268 }
 0x17a   : > { %v270_v11 = vmul.f32 0.032258064, %v269_v10 }
 0x17c   : > { %554 = vrsqrt.f32 %v270_v11  ;;  %vm273_vm2 = vcmp.eq.f32.partialorder %v270_v11, inf  ;;  %v276_v14 = vand.u32 2147483648, %v270_v11  ;;  %vm275_vm3 = vcmp.eq.f32.partialorder %v270_v11, 0.0 }
 0x186   : > { %v555_v12 = vpop.eup %554 }
 0x187   : > { %v272_v13 = vmul.f32 %v555_v12, %v270_v11 }
 0x189   : > { %v274_v15 = vsel %vm273_vm2, %v270_v11, %v272_v13 }
 0x18a   : > { %v277_v16 = vsel %vm275_vm3, %v276_v14, %v274_v15 }
 0x18b   : > { %v278_v17 = vadd.f32 1e-06, %v277_v16 }
 0x18d   : > { %556 = vrcp.f32 %v278_v17 }
 0x197   : > { %v557_v18 = vpop.eup %556 }
 0x198   : > { %v281_v20 = vmul.f32 %v557_v18, %v265_v4 }
 0x19a   : > { %v288_v22 = vmul.f32 %v470_v19, %v281_v20 }
 0x19c   : > { %v295_v23 = vadd.f32 %v471_v21, %v288_v22 }
 0x19e   : > { %v296_v24 = vpack.c.bf16 %v295_v23, %v295_v23 }
 0x1a0   : > { %488 = vmatmul.mubr.msk.bf16.vlgmr.msra.gmra.mrb[0].mxu0 %vm259_vm0, %v296_v24 }
 0x273   : > { %v357_v26 = vpop.f32.mrb[0].mxu0 }
 0x274   : > { %v358_v27 = vadd.f32 %v472_v25, %v357_v26  ;;  %v489_v28 = vpop.f32.mrb[1].mxu0 }
 0x275   : > { %v360_v29 = vpop.f32.mrb[2].mxu0 }
 0x276   : > { %v363_v30 = vpack.c.bf16 %v358_v27, %v358_v27  ;;  %v490_v31 = vpop.f32.mrb[3].mxu0 }
 0x278   : > { %365 = vst.msk [vmem:[%s254_s10] sm:$0xf] %vm364_vm4, %v363_v30 }
 0x279   : > { %629 = shalt.err (!%p626_p7)
}
 0x27a   : > { %s630_s16 = scalar_lea.hbm %s890_s17, 64  ;;  %s634_s7 = scalar_lea.hbm %s939_s5, 128 }
 0x27b   : > { %p631_p9 = scmp.ne.s32.totalorder %s890_s17, %s630_s16  ;;  %p635_p0 = scmp.lt.u32.totalorder %s890_s17, %s939_s5 }
 0x27c   : > { %p636_p1 = scmp.lt.u32.totalorder %s634_s7, %s630_s16  ;;  %p638_p4 = scmp.lt.u32.totalorder %s630_s16, %s890_s17 }
 0x27d   : > { %p632_p2 = pnand %p631_p9, %p816_p12 }
 0x27e   : > { %p637_p11 = por %p636_p1, %p635_p0 }
 0x27f   : > { %p633_p5 = pneg %p632_p2 }
 0x280   : > { %p639_p6 = por %p638_p4, %p637_p11 }
 0x282   : > { %p640_p8 = pnand %p639_p6, %p633_p5 }
 0x284   : > { %643 = shalt.err (!%p640_p8)
}
 0x285   : > { %497 = dma.vmem_to_hbm [thread:$0]  (%p816_p12), %s892_s29, 64, %s890_s17, %s367_s22  }
 0x286 PF: > { %s392_s12 = sand.u32 1, %s674_s18   ;;  %p954_p10 = scmp.ne.s32.totalorder %s944_s25, 0 }
 0x287   : > { %p955_p13 = scmp.ge.s32.totalorder %s686_s21, 2  ;;  %s393_s10 = scalar_lea.sflag [#allocation4], %s392_s12 }
 0x289   : > { %p508_p3 = pnand %p955_p13, %p954_p10 }
 0x28b   : > { %669 = dma.done.wait (!%p508_p3), %s393_s10, 64  }
 0x28c   : > { %671 = vsyncadd (!%p508_p3), %s393_s10, 4294967232  ;;  %p19_p7 = scmp.ge.s32.totalorder %s781_s30, 4   ;;  %s956_s18 = smov %s678_s19 }
 0x28d   : > { %s957_s19 = smov %s682_s20  ;;  %s958_s20 = smov %s812_s8 }
 0x28e   : > { %s959_s21 = smov %s781_s30  ;;  %21 = sbr.rel (!%p19_p7) target bundleno = 6 (0x6), region = 89 }
 0x295   :  { %398 = vsyncpa [#allocation3], 1 }
 0x296   :  { %400 = vsyncpa [#allocation3 + $0x1], 1 }
 0x297   :  { %401 = vsyncpa [#allocation6], 1 }
 0x298   :  { %402 = vsyncpa [#allocation4], 1 }
 0x299   :  { %404 = vsyncpa [#allocation4 + $0x1], 1 }

</bundles_post_ra>
